<compile_context>
chip_gen: v5e
topology: v5e:2x2
jax: 0.10.0
libtpu: 0.0.40
codegen_flags: <defaults>
</compile_context>

<pallas_src>
import functools

import jax
import jax.numpy as jnp
from jax.experimental import pallas as pl
from jax.experimental.pallas import tpu as pltpu

FEATURE_DIM = 4 * 4 * 15   # 240
HIDDEN_1 = 60
HIDDEN_2 = 20
ACTIONS = 4

DEFAULT_TILE_B = 4096      # multiple of 16; f32 x tile = 4096*240*4 B ~ 3.75 MiB


def _round_up(n, m):
    return ((n + m - 1) // m) * m


def _choose_tile(batch, tile_b):
    """Batch-tile size: multiple of 16, <= padded batch, >= 2 grid steps when possible."""
    tb = min(_round_up(tile_b, 16), _round_up(batch, 16))
    if batch > 16:
        # Ensure at least two grid steps so v7x can shard the "parallel" axis
        # across its two TensorCores (no-op on 1-TC v5e/v6e).
        tb = min(tb, _round_up(pl.cdiv(batch, 2), 16))
    return max(tb, 16)


def _policy_kernel(x_ref, w1_ref, b1_ref, w2_ref, b2_ref, w3_ref, b3_ref, o_ref):
    # One batch tile per grid step; everything below fits comfortably in VMEM.
    # Cast to bf16 in-kernel (HBM traffic stays f32-of-x only, no wrapper copy).
    x = x_ref[...].astype(jnp.bfloat16)                                  # (TB, 240)

    # fc1: bf16 x bf16 -> f32 accumulate on the MXU, bias + ReLU in f32.
    h1 = jnp.dot(x, w1_ref[...], preferred_element_type=jnp.float32)    # (TB, 60)
    h1 = jnp.maximum(h1 + b1_ref[...], 0.0)

    # fc2: bf16 operands, f32 accumulation.
    h2 = jnp.dot(h1.astype(jnp.bfloat16), w2_ref[...],
                 preferred_element_type=jnp.float32)                    # (TB, 20)
    h2 = jnp.maximum(h2 + b2_ref[...], 0.0)

    # fc3: bf16 operands, f32 accumulation, bias in f32.
    logits = jnp.dot(h2.astype(jnp.bfloat16), w3_ref[...],
                     preferred_element_type=jnp.float32)                # (TB, 4)
    logits = logits + b3_ref[...]

    # Numerically-stable softmax over the actions axis (dim=1 in torch).
    # Exact divide: rows must sum to 1 (approx reciprocal is not good enough).
    m = jnp.max(logits, axis=-1, keepdims=True)
    e = jnp.exp(logits - m)
    denom = jnp.sum(e, axis=-1, keepdims=True)
    o_ref[...] = (e / denom).astype(o_ref.dtype)


def prepare_params(params):
    """One-time conversion from PyTorch layout (out,in) to kernel layout (in,out).

    Done once so per-call forward passes emit no transpose/reshape/cast XLA ops.
    Weights go to bf16 (MXU operands, f32 accumulation); biases stay f32.
    """
    return {
        "w1": jnp.asarray(params["w1"]).T.astype(jnp.bfloat16),          # (240, 60)
        "b1": jnp.asarray(params["b1"]).reshape(1, -1).astype(jnp.float32),
        "w2": jnp.asarray(params["w2"]).T.astype(jnp.bfloat16),          # (60, 20)
        "b2": jnp.asarray(params["b2"]).reshape(1, -1).astype(jnp.float32),
        "w3": jnp.asarray(params["w3"]).T.astype(jnp.bfloat16),          # (20, 4)
        "b3": jnp.asarray(params["b3"]).reshape(1, -1).astype(jnp.float32),
    }


@functools.partial(jax.jit, static_argnames=("tile_b",))
def policy_network_forward(x, prepared, tile_b=DEFAULT_TILE_B):
    """x: (B, 240) f32. prepared: output of prepare_params(). Returns (B, 4) f32."""
    B = x.shape[0]
    tb = _choose_tile(B, tile_b)
    B_pad = _round_up(B, tb)
    if B_pad != B:
        # Only materialize a padded copy when the batch is ragged; x stays f32
        # (the bf16 cast happens inside the kernel, not as an HBM round trip).
        x = jnp.pad(x, ((0, B_pad - B), (0, 0)))

    grid = (B_pad // tb,)

    flops = 2 * B_pad * (FEATURE_DIM * HIDDEN_1 + HIDDEN_1 * HIDDEN_2 + HIDDEN_2 * ACTIONS)
    weight_bytes = ((FEATURE_DIM * HIDDEN_1 + HIDDEN_1 * HIDDEN_2 + HIDDEN_2 * ACTIONS) * 2
                    + (HIDDEN_1 + HIDDEN_2 + ACTIONS) * 4)
    bytes_accessed = B_pad * FEATURE_DIM * 4 + B_pad * ACTIONS * 4 + weight_bytes
    cost = pl.CostEstimate(flops=flops,
                           bytes_accessed=bytes_accessed,
                           transcendentals=B_pad * ACTIONS)

    out = pl.pallas_call(
        _policy_kernel,
        out_shape=jax.ShapeDtypeStruct((B_pad, ACTIONS), jnp.float32),
        grid=grid,
        in_specs=[
            pl.BlockSpec((tb, FEATURE_DIM), lambda i: (i, 0)),           # x tile (f32)
            pl.BlockSpec((FEATURE_DIM, HIDDEN_1), lambda i: (0, 0)),     # w1 (resident)
            pl.BlockSpec((1, HIDDEN_1), lambda i: (0, 0)),               # b1
            pl.BlockSpec((HIDDEN_1, HIDDEN_2), lambda i: (0, 0)),        # w2
            pl.BlockSpec((1, HIDDEN_2), lambda i: (0, 0)),               # b2
            pl.BlockSpec((HIDDEN_2, ACTIONS), lambda i: (0, 0)),         # w3
            pl.BlockSpec((1, ACTIONS), lambda i: (0, 0)),                # b3
        ],
        out_specs=pl.BlockSpec((tb, ACTIONS), lambda i: (i, 0)),
        compiler_params=pltpu.CompilerParams(
            dimension_semantics=("parallel",),          # v7x: shard tiles over 2 TCs
            vmem_limit_bytes=32 * 1024 * 1024,          # ok on v5e/v6e/v7x at these tiles
        ),
        cost_estimate=cost,
    )(x, prepared["w1"], prepared["b1"], prepared["w2"], prepared["b2"],
      prepared["w3"], prepared["b3"])

    return out[:B]


def init_params(key):
    """Deterministic init matching torch.nn.Linear shapes (out_dim, in_dim)."""
    ks = jax.random.split(key, 6)

    def uniform(k, shape, fan_in):
        bound = 1.0 / jnp.sqrt(fan_in)
        return jax.random.uniform(k, shape, jnp.float32, -bound, bound)

    return {
        "w1": uniform(ks[0], (HIDDEN_1, FEATURE_DIM), FEATURE_DIM),
        "b1": uniform(ks[1], (HIDDEN_1,), FEATURE_DIM),
        "w2": uniform(ks[2], (HIDDEN_2, HIDDEN_1), HIDDEN_1),
        "b2": uniform(ks[3], (HIDDEN_2,), HIDDEN_1),
        "w3": uniform(ks[4], (ACTIONS, HIDDEN_2), HIDDEN_2),
        "b3": uniform(ks[5], (ACTIONS,), HIDDEN_2),
    }


def reference_forward(x, p):
    h1 = jnp.maximum(x @ p["w1"].T + p["b1"], 0.0)
    h2 = jnp.maximum(h1 @ p["w2"].T + p["b2"], 0.0)
    logits = h2 @ p["w3"].T + p["b3"]
    return jax.nn.softmax(logits, axis=1)


if __name__ == "__main__":
    key = jax.random.PRNGKey(0)
    k_param, k_x1, k_x2 = jax.random.split(key, 3)
    params = init_params(k_param)
    prepared = prepare_params(params)

    # Case 1: tiny batch (single grid step, tail-padded to one 16-row tile).
    B1 = 8
    x1 = jax.random.normal(k_x1, (B1, FEATURE_DIM), dtype=jnp.float32)
    out1 = jax.block_until_ready(policy_network_forward(x1, prepared))
    ref1 = reference_forward(x1, params)
    assert out1.shape == (B1, ACTIONS)
    assert jnp.allclose(jnp.sum(out1, axis=1), 1.0, atol=2e-3)
    assert jnp.allclose(out1, ref1, atol=2e-2, rtol=2e-2)

    # Case 2: batch not a multiple of the tile -> exercises multi-step grid +
    # tail padding.
    B2 = 300
    x2 = jax.random.normal(k_x2, (B2, FEATURE_DIM), dtype=jnp.float32)
    out2 = jax.block_until_ready(policy_network_forward(x2, prepared, tile_b=128))
    ref2 = reference_forward(x2, params)
    assert out2.shape == (B2, ACTIONS)
    assert jnp.allclose(jnp.sum(out2, axis=1), 1.0, atol=2e-3)
    assert jnp.allclose(out2, ref2, atol=2e-2, rtol=2e-2)

    print("KERNEL_OK")
</pallas_src>

<mosaic_0001>
module attributes {stable_mosaic.version = 11 : i64} {
  func.func @_policy_kernel(%arg0: i32, %arg1: memref<16x240xf32, #tpu.memory_space<vmem>>, %arg2: memref<240x60xbf16, #tpu.memory_space<vmem>>, %arg3: memref<1x60xf32, #tpu.memory_space<vmem>>, %arg4: memref<60x20xbf16, #tpu.memory_space<vmem>>, %arg5: memref<1x20xf32, #tpu.memory_space<vmem>>, %arg6: memref<20x4xbf16, #tpu.memory_space<vmem>>, %arg7: memref<1x4xf32, #tpu.memory_space<vmem>>, %arg8: memref<16x4xf32, #tpu.memory_space<vmem>>) attributes {dimension_semantics = [#tpu.dimension_semantics<parallel>], iteration_bounds = array<i64: 1>, scalar_prefetch = 0 : i64, scratch_operands = 0 : i64, tpu.core_type = #tpu.core_type<tc>, window_params = [{transform_indices = @transform_0, window_bounds = array<i64: 16, 240>}, {pipeline_mode = #tpu.pipeline_mode<synchronous>, transform_indices = @transform_1, window_bounds = array<i64: 240, 60>}, {pipeline_mode = #tpu.pipeline_mode<synchronous>, transform_indices = @transform_2, window_bounds = array<i64: 1, 60>}, {pipeline_mode = #tpu.pipeline_mode<synchronous>, transform_indices = @transform_3, window_bounds = array<i64: 60, 20>}, {pipeline_mode = #tpu.pipeline_mode<synchronous>, transform_indices = @transform_4, window_bounds = array<i64: 1, 20>}, {pipeline_mode = #tpu.pipeline_mode<synchronous>, transform_indices = @transform_5, window_bounds = array<i64: 20, 4>}, {pipeline_mode = #tpu.pipeline_mode<synchronous>, transform_indices = @transform_6, window_bounds = array<i64: 1, 4>}, {transform_indices = @transform_7, window_bounds = array<i64: 16, 4>}]} {
    %c0 = arith.constant 0 : index
    %c0_0 = arith.constant 0 : index
    %0 = vector.load %arg1[%c0, %c0_0] : memref<16x240xf32, #tpu.memory_space<vmem>>, vector<16x240xf32>
    %1 = arith.truncf %0 : vector<16x240xf32> to vector<16x240xbf16>
    %c0_1 = arith.constant 0 : index
    %c0_2 = arith.constant 0 : index
    %2 = vector.load %arg2[%c0_1, %c0_2] : memref<240x60xbf16, #tpu.memory_space<vmem>>, vector<240x60xbf16>
    %cst = arith.constant dense<0.000000e+00> : vector<16x60xf32>
    %3 = tpu.matmul %1, %2, %cst {dimension_numbers = #tpu.dot_dimension_numbers<[1], [0], [0], [1], [0, 0, 1, 1], [], []>} : vector<16x240xbf16>, vector<240x60xbf16>, vector<16x60xf32> -> vector<16x60xf32>
    %c0_3 = arith.constant 0 : index
    %c0_4 = arith.constant 0 : index
    %4 = vector.load %arg3[%c0_3, %c0_4] : memref<1x60xf32, #tpu.memory_space<vmem>>, vector<1x60xf32>
    %5 = vector.broadcast %4 : vector<1x60xf32> to vector<16x60xf32>
    %6 = arith.addf %3, %5 : vector<16x60xf32>
    %cst_5 = arith.constant 0.000000e+00 : f32
    %7 = vector.broadcast %cst_5 : f32 to vector<16x60xf32>
    %8 = arith.maximumf %6, %7 : vector<16x60xf32>
    %9 = arith.truncf %8 : vector<16x60xf32> to vector<16x60xbf16>
    %c0_6 = arith.constant 0 : index
    %c0_7 = arith.constant 0 : index
    %10 = vector.load %arg4[%c0_6, %c0_7] : memref<60x20xbf16, #tpu.memory_space<vmem>>, vector<60x20xbf16>
    %cst_8 = arith.constant dense<0.000000e+00> : vector<16x20xf32>
    %11 = tpu.matmul %9, %10, %cst_8 {dimension_numbers = #tpu.dot_dimension_numbers<[1], [0], [0], [1], [0, 0, 1, 1], [], []>} : vector<16x60xbf16>, vector<60x20xbf16>, vector<16x20xf32> -> vector<16x20xf32>
    %c0_9 = arith.constant 0 : index
    %c0_10 = arith.constant 0 : index
    %12 = vector.load %arg5[%c0_9, %c0_10] : memref<1x20xf32, #tpu.memory_space<vmem>>, vector<1x20xf32>
    %13 = vector.broadcast %12 : vector<1x20xf32> to vector<16x20xf32>
    %14 = arith.addf %11, %13 : vector<16x20xf32>
    %cst_11 = arith.constant 0.000000e+00 : f32
    %15 = vector.broadcast %cst_11 : f32 to vector<16x20xf32>
    %16 = arith.maximumf %14, %15 : vector<16x20xf32>
    %17 = arith.truncf %16 : vector<16x20xf32> to vector<16x20xbf16>
    %c0_12 = arith.constant 0 : index
    %c0_13 = arith.constant 0 : index
    %18 = vector.load %arg6[%c0_12, %c0_13] : memref<20x4xbf16, #tpu.memory_space<vmem>>, vector<20x4xbf16>
    %cst_14 = arith.constant dense<0.000000e+00> : vector<16x4xf32>
    %19 = tpu.matmul %17, %18, %cst_14 {dimension_numbers = #tpu.dot_dimension_numbers<[1], [0], [0], [1], [0, 0, 1, 1], [], []>} : vector<16x20xbf16>, vector<20x4xbf16>, vector<16x4xf32> -> vector<16x4xf32>
    %c0_15 = arith.constant 0 : index
    %c0_16 = arith.constant 0 : index
    %20 = vector.load %arg7[%c0_15, %c0_16] : memref<1x4xf32, #tpu.memory_space<vmem>>, vector<1x4xf32>
    %21 = vector.broadcast %20 : vector<1x4xf32> to vector<16x4xf32>
    %22 = arith.addf %19, %21 : vector<16x4xf32>
    %cst_17 = arith.constant dense<0xFF800000> : vector<16xf32>
    %23 = vector.multi_reduction <maximumf>, %22, %cst_17 [1] : vector<16x4xf32> to vector<16xf32>
    %24 = vector.shape_cast %23 : vector<16xf32> to vector<16x1xf32>
    %25 = vector.broadcast %24 : vector<16x1xf32> to vector<16x4xf32>
    %26 = arith.subf %22, %25 : vector<16x4xf32>
    %27 = math.exp %26 : vector<16x4xf32>
    %cst_18 = arith.constant dense<0.000000e+00> : vector<16xf32>
    %28 = vector.multi_reduction <add>, %27, %cst_18 [1] : vector<16x4xf32> to vector<16xf32>
    %29 = vector.shape_cast %28 : vector<16xf32> to vector<16x1xf32>
    %30 = vector.broadcast %29 : vector<16x1xf32> to vector<16x4xf32>
    %31 = arith.divf %27, %30 : vector<16x4xf32>
    %c0_19 = arith.constant 0 : index
    %c0_20 = arith.constant 0 : index
    %32 = vector.load %arg8[%c0_19, %c0_20] : memref<16x4xf32, #tpu.memory_space<vmem>>, vector<16x4xf32>
    tpu.vector_store %arg8[%c0_19, %c0_20], %31 {strides = array<i32>} : memref<16x4xf32, #tpu.memory_space<vmem>>, vector<16x4xf32>,
    return
  }
  func.func @transform_0(%arg0: i32) -> (i32, i32) {
    %c0_i32 = arith.constant 0 : i32
    %c0_i32_0 = arith.constant 0 : i32
    return %arg0, %c0_i32 : i32, i32
  }
  func.func @transform_1(%arg0: i32) -> (i32, i32) {
    %c0_i32 = arith.constant 0 : i32
    %c0_i32_0 = arith.constant 0 : i32
    %c0_i32_1 = arith.constant 0 : i32
    return %c0_i32, %c0_i32_0 : i32, i32
  }
  func.func @transform_2(%arg0: i32) -> (i32, i32) {
    %c0_i32 = arith.constant 0 : i32
    %c0_i32_0 = arith.constant 0 : i32
    %c0_i32_1 = arith.constant 0 : i32
    return %c0_i32, %c0_i32_0 : i32, i32
  }
  func.func @transform_3(%arg0: i32) -> (i32, i32) {
    %c0_i32 = arith.constant 0 : i32
    %c0_i32_0 = arith.constant 0 : i32
    %c0_i32_1 = arith.constant 0 : i32
    return %c0_i32, %c0_i32_0 : i32, i32
  }
  func.func @transform_4(%arg0: i32) -> (i32, i32) {
    %c0_i32 = arith.constant 0 : i32
    %c0_i32_0 = arith.constant 0 : i32
    %c0_i32_1 = arith.constant 0 : i32
    return %c0_i32, %c0_i32_0 : i32, i32
  }
  func.func @transform_5(%arg0: i32) -> (i32, i32) {
    %c0_i32 = arith.constant 0 : i32
    %c0_i32_0 = arith.constant 0 : i32
    %c0_i32_1 = arith.constant 0 : i32
    return %c0_i32, %c0_i32_0 : i32, i32
  }
  func.func @transform_6(%arg0: i32) -> (i32, i32) {
    %c0_i32 = arith.constant 0 : i32
    %c0_i32_0 = arith.constant 0 : i32
    %c0_i32_1 = arith.constant 0 : i32
    return %c0_i32, %c0_i32_0 : i32, i32
  }
  func.func @transform_7(%arg0: i32) -> (i32, i32) {
    %c0_i32 = arith.constant 0 : i32
    %c0_i32_0 = arith.constant 0 : i32
    return %arg0, %c0_i32 : i32, i32
  }
}

</mosaic_0001>

<bundles_post_ra>
// kernel: policy_network_forward.1
= control target key start
LH: loop header
LB: loop body
LE: loop exit
PB: predicated region body
PF: predicated region fallthrough
CT: control target
= control target key end

     0   :  { %vm157_vm0 = vcmask 916480   ;;  %vm231_vm1 = vcmask 1045504   ;;  %vm227_vm2 = vcmask 490496   ;;  %vm272_vm3 = vcmask 1041408   ;;  %s598_s1 = inlined_call_operand.vmem [shape: bf16[240,60], index: 1, kind: input, shape index: {}]   ;;  %s599_s0 = inlined_call_operand.vmem [shape: f32[16,240], index: 0, kind: input, shape index: {}]   ;;  %s600_s2 = inlined_call_operand.vmem [shape: f32[1,60], index: 2, kind: input, shape index: {}]   ;;  %s601_s4 = inlined_call_operand.vmem [shape: f32[1,20], index: 4, kind: input, shape index: {}]   ;;  %s602_s3 = inlined_call_operand.vmem [shape: bf16[60,20], index: 3, kind: input, shape index: {}]   ;;  %s603_s6 = inlined_call_operand.vmem [shape: f32[1,4], index: 6, kind: input, shape index: {}]   ;;  %s604_s5 = inlined_call_operand.vmem [shape: bf16[20,4], index: 5, kind: input, shape index: {}]   ;;  %s605_s7 = inlined_call_operand.vmem [shape: f32[16,4], index: 7, kind: output, shape index: {}]  }
   0x1   :  { %v435_v0 = vld [vmem:[%s598_s1 + $0x38] sm:$0xff]  ;;  %v442_v1 = vld [vmem:[%s598_s1 + $0x70] sm:$0xff]  ;;  %v441_v3 = vld [vmem:[%s598_s1 + $0x68] sm:$0xff]  ;;  %vm268_vm4 = vcmask 162816   ;;  %vm290_vm5 = vcmask 31744  }
   0x2   :  { %161 = vmatpush.bf16.msra.mxu0 %v435_v0  ;;  %176 = vmatpush.bf16.msra.mxu1 %v442_v1  ;;  %v434_v2 = vld [vmem:[%s598_s1 + $0x30] sm:$0xff]  ;;  %v433_v4 = vld [vmem:[%s598_s1 + $0x28] sm:$0xff]  ;;  %v440_v5 = vld [vmem:[%s598_s1 + $0x60] sm:$0xff] }
   0x3   :  { %v432_v6 = vld [vmem:[%s598_s1 + $0x20] sm:$0xff]  ;;  %v439_v7 = vld [vmem:[%s598_s1 + $0x58] sm:$0xff]  ;;  %v438_v9 = vld [vmem:[%s598_s1 + $0x50] sm:$0xff] }
   0x4   :  { %v431_v8 = vld [vmem:[%s598_s1 + $0x18] sm:$0xff]  ;;  %v430_v10 = vld [vmem:[%s598_s1 + $0x10] sm:$0xff]  ;;  %v437_v11 = vld [vmem:[%s598_s1 + $0x48] sm:$0xff] }
   0x5   :  { %v429_v12 = vld [vmem:[%s598_s1 + $0x8] sm:$0xff]  ;;  %v436_v13 = vld [vmem:[%s598_s1 + $0x40] sm:$0xff]  ;;  %v30_v15 = vld [vmem:[%s599_s0 + $0x18] sm:$0xff] }
   0x6   :  { %162 = vmatpush.bf16.msra.mxu0 %v434_v2  ;;  %177 = vmatpush.bf16.msra.mxu1 %v441_v3  ;;  %v28_v14 = vld [vmem:[%s599_s0 + $0x8] sm:$0xff]  ;;  %v428_v17 = vld [vmem:[%s598_s1] sm:$0xff]  ;;  %v29_v19 = vld [vmem:[%s599_s0 + $0x10] sm:$0xff] }
   0x7   :  { %v32_v16 = vpack.c.bf16 %v30_v15, %v28_v14  ;;  %v27_v18 = vld [vmem:[%s599_s0] sm:$0xff]  ;;  %v420_v21 = vld [vmem:[%s602_s3 + $0x18] sm:$0xf]  ;;  %v446_v22 = vld [vmem:[%s602_s3 + $0x18] sm:$0x30] }
   0x8   :  { %v31_v20 = vpack.c.bf16 %v29_v19, %v27_v18  ;;  %v421_v23 = vor.u32 %v446_v22, %v420_v21  ;;  %v445_v25 = vld [vmem:[%s602_s3 + $0x10] sm:$0xff]  ;;  %v444_v26 = vld [vmem:[%s602_s3 + $0x8] sm:$0xff]  ;;  %v443_v27 = vld [vmem:[%s602_s3] sm:$0xff] }
   0x9   :  { %v448_v30 = vld [vmem:[%s600_s2] ss:$0 sm:$0xff]  ;;  %v254_v40 = vld [vmem:[%s604_s5 + $0x8] sm:$0x3] }
   0xa   :  { %163 = vmatpush.bf16.msra.mxu0 %v433_v4  ;;  %178 = vmatpush.bf16.msra.mxu1 %v440_v5  ;;  %v233_v24 = vsel %vm231_vm1, %v421_v23, 0  ;;  %v264_v41 = vunpack.c.l.b16 %v254_v40  ;;  %v447_v44 = vld [vmem:[%s604_s5] sm:$0xff] }
   0xb   :  { %239 = vmatpush.bf16.msra.mxu2 %v233_v24  ;;  %v449_v46 = vld [vmem:[%s601_s4] ss:$0 sm:$0xff] }
   0xc   :  { %v266_v42 = vpack.c.b16 %v264_v41, %v264_v41  ;;  %v450_v53 = vld [vmem:[%s603_s6] ss:$0 sm:$0xff] }
   0xe   :  { %164 = vmatpush.bf16.msra.mxu0 %v432_v6  ;;  %179 = vmatpush.bf16.msra.mxu1 %v439_v7  ;;  %v274_v43 = vsel %vm272_vm3, %v266_v42, 0 }
   0xf   :  { %240 = vmatpush.bf16.msra.mxu2 %v445_v25  ;;  %282 = vmatpush.bf16.msra.mxu3 %v274_v43 }
  0x12   :  { %165 = vmatpush.bf16.msra.mxu0 %v431_v8  ;;  %180 = vmatpush.bf16.msra.mxu1 %v438_v9 }
  0x13   :  { %241 = vmatpush.bf16.msra.mxu2 %v444_v26  ;;  %283 = vmatpush.bf16.msra.mxu3 %v447_v44 }
  0x16   :  { %166 = vmatpush.bf16.msra.mxu0 %v430_v10  ;;  %181 = vmatpush.bf16.msra.mxu1 %v437_v11 }
  0x17   :  { %242 = vmatpush.bf16.msra.mxu2 %v443_v27 }
  0x1a   :  { %167 = vmatpush.bf16.msra.mxu0 %v429_v12  ;;  %182 = vmatpush.bf16.msra.mxu1 %v436_v13 }
  0x1d   :  { %405 = vmatmul.msk.bf16.vlgmr.msra.gmra.mxu1 %vm157_vm0, %v32_v16 }
  0x1e   :  { %168 = vmatpush.bf16.msra.mxu0 %v428_v17 }
  0x21   :  { %169 = vmatmul.bf16.vlgmr.msra.gmra.mxu0 %v31_v20 }
  0x9a   :  { %v184_v28 = vpop.f32.mrf.mxu1 }
  0x9e   :  { %v170_v29 = vpop.f32.mrf.mxu0 }
  0x9f   :  { %v171_v31 = vadd.f32 %v448_v30, %v170_v29 }
  0xa1   :  { %v185_v33 = vadd.f32 %v184_v28, %v171_v31 }
  0xa2   :  { %v186_v35 = vpop.f32.mrf.mxu1 }
  0xa3   :  { %v189_v37 = vmax.f32 %v185_v33, 0.0 }
  0xa6   :  { %v172_v32 = vpop.f32.mrf.mxu0 }
  0xa7   :  { %v173_v34 = vadd.f32 %v448_v30, %v172_v32 }
  0xa9   :  { %v187_v36 = vadd.f32 %v186_v35, %v173_v34 }
  0xab   :  { %v190_v38 = vmax.f32 %v187_v36, 0.0 }
  0xad   :  { %v191_v39 = vpack.c.bf16 %v190_v38, %v189_v37 }
  0xaf   :  { %422 = vmatmul.msk.bf16.vlgmr.msra.gmra.mxu2 %vm227_vm2, %v191_v39 }
 0x132   :  { %v244_v45 = vpop.f32.mrf.mxu2 }
 0x133   :  { %v245_v47 = vadd.f32 %v449_v46, %v244_v45 }
 0x135   :  { %v249_v50 = vmax.f32 %v245_v47, 0.0 }
 0x13a   :  { %v246_v48 = vpop.f32.mrf.mxu2 }
 0x13b   :  { %v247_v49 = vadd.f32 %v449_v46, %v246_v48 }
 0x13d   :  { %v250_v51 = vmax.f32 %v247_v49, 0.0 }
 0x13f   :  { %v251_v52 = vpack.c.bf16 %v250_v51, %v249_v50 }
 0x141   :  { %427 = vmatmul.msk.bf16.vlgmr.msra.gmra.mxu3 %vm268_vm4, %v251_v52 }
 0x1c4   :  { %v285_v54 = vpop.f32.mrf.mxu3 }
 0x1c5   :  { %v286_v55 = vadd.f32 %v450_v53, %v285_v54 }
 0x1c7   :  { %v291_v56 = vsel %vm290_vm5, %v286_v55, -inf }
 0x1c8   :  { %292 = vmax.xlane.f32.xlu0 %v291_v56 }
 0x1cc   :  { %v287_v57 = vpop.f32.mrf.mxu3 }
 0x1cd   :  { %v288_v58 = vadd.f32 %v450_v53, %v287_v57 }
 0x1cf   :  { %v294_v59 = vsel %vm290_vm5, %v288_v58, -inf }
 0x1d0   :  { %295 = vmax.xlane.f32.xlu0 %v294_v59 }
 0x23b   :  { %v293_v60 = vpop.xlane.xlu0 %292 }
 0x23c   :  { %v297_v61 = vsub.f32 %v286_v55, %v293_v60 }
 0x23e   :  { %v299_v62 = vmul.f32 1.442695, %v297_v61 }
 0x240   :  { %451 = vpow2.f32 %v299_v62 }
 0x243   :  { %v296_v63 = vpop.xlane.xlu0 %295 }
 0x244   :  { %v298_v0 = vsub.f32 %v288_v58, %v296_v63 }
 0x246   :  { %v452_v1 = vpop.eup %451  ;;  %v301_v2 = vmul.f32 1.442695, %v298_v0 }
 0x247   :  { %v303_v3 = vsel %vm290_vm5, %v452_v1, 0.0 }
 0x248   :  { %453 = vpow2.f32 %v301_v2  ;;  %304 = vadd.xlane.f32.xlu1 %v303_v3 }
 0x24e   :  { %v454_v4 = vpop.eup %453 }
 0x24f   :  { %v306_v5 = vsel %vm290_vm5, %v454_v4, 0.0 }
 0x250   :  { %307 = vadd.xlane.f32.xlu1 %v306_v5 }
 0x2bb   :  { %v305_v6 = vpop.xlane.xlu1 %304 }
 0x2bc   :  { %455 = vrcp.f32 %v305_v6  ;;  %v320_v11 = vand.u32 2147483648, %v305_v6  ;;  %v318_v13 = vand.u32 2147483647, %v305_v6  ;;  %vm314_vm7 = vweird.f32 %v305_v6 }
 0x2be   :  { %v321_v16 = vor.u32 1.1754944e-38, %v320_v11  ;;  %vm319_vm9 = vcmp.eq.f32.partialorder %v318_v13, 8.507059e+37 }
 0x2c2   :  { %v456_v7 = vpop.eup %455 }
 0x2c3   :  { %v310_v8 = vmul.f32 %v456_v7, %v305_v6  ;;  %v308_v9 = vpop.xlane.xlu1 %307  ;;  %vm315_vm6 = vweird.f32 %v456_v7 }
 0x2c4   :  { %457 = vrcp.f32 %v308_v9  ;;  %vm316_vm8 = vmor %vm314_vm7, %vm315_vm6  ;;  %v335_v22 = vand.u32 2147483648, %v308_v9  ;;  %v333_v24 = vand.u32 2147483647, %v308_v9  ;;  %vm329_vm11 = vweird.f32 %v308_v9 }
 0x2c5   :  { %v311_v10 = vsub.f32 1.0, %v310_v8 }
 0x2c6   :  { %v336_v26 = vor.u32 1.1754944e-38, %v335_v22  ;;  %vm334_vm13 = vcmp.eq.f32.partialorder %v333_v24, 8.507059e+37 }
 0x2c7   :  { %v312_v12 = vmul.f32 %v456_v7, %v311_v10 }
 0x2c9   :  { %v313_v14 = vadd.f32 %v456_v7, %v312_v12 }
 0x2ca   :  { %v458_v15 = vpop.eup %457 }
 0x2cb   :  { %v317_v17 = vsel %vm316_vm8, %v456_v7, %v313_v14  ;;  %v325_v18 = vmul.f32 %v458_v15, %v308_v9  ;;  %vm330_vm10 = vweird.f32 %v458_v15 }
 0x2cc   :  { %v322_v19 = vsel %vm319_vm9, %v321_v16, %v317_v17  ;;  %vm331_vm12 = vmor %vm329_vm11, %vm330_vm10 }
 0x2cd   :  { %v323_v20 = vmul.f32 %v452_v1, %v322_v19  ;;  %v326_v21 = vsub.f32 1.0, %v325_v18 }
 0x2cf   :  { %339 = vst.msk [vmem:[%s605_s7] sm:$0xff] %vm290_vm5, %v323_v20  ;;  %v327_v23 = vmul.f32 %v458_v15, %v326_v21 }
 0x2d1   :  { %v328_v25 = vadd.f32 %v458_v15, %v327_v23 }
 0x2d3   :  { %v332_v27 = vsel %vm331_vm12, %v458_v15, %v328_v25 }
 0x2d4   :  { %v337_v28 = vsel %vm334_vm13, %v336_v26, %v332_v27 }
 0x2d5   :  { %v338_v29 = vmul.f32 %v454_v4, %v337_v28 }
 0x2d7   :  { %340 = vst.msk [vmem:[%s605_s7 + $0x8] sm:$0xff] %vm290_vm5, %v338_v29 }

</bundles_post_ra>
